<compile_context>
chip_gen: v6e
topology: v6e:2x2x1
jax: 0.10.0
libtpu: 0.0.40
codegen_flags: <defaults>
</compile_context>

<pallas_src>
import jax
import jax.numpy as jnp
from jax import lax
from jax.experimental import pallas as pl
from jax.experimental.pallas import tpu as pltpu


def _shift1(x, direction):
    """Shift a (C, L) tile by one along L with zero boundary.

    direction=+1 -> out[:, l] = x[:, l-1];  direction=-1 -> out[:, l] = x[:, l+1].
    """
    C, L = x.shape
    if L % 128 == 0:
        # Lane-aligned: rotate on the XLU and mask the single wrapped lane.
        lane = lax.broadcasted_iota(jnp.int32, (1, L), 1)
        if direction == 1:
            rolled = pltpu.roll(x, 1, 1)
            edge = lane == 0
        else:
            rolled = pltpu.roll(x, L - 1, 1)   # == roll by -1
            edge = lane == (L - 1)
        return jnp.where(edge, jnp.zeros_like(rolled), rolled)
    # Unaligned lane extent: build the shift from a zero column + slice.
    zero_col = jnp.zeros((C, 1), x.dtype)
    if direction == 1:
        return jnp.concatenate([zero_col, x[:, : L - 1]], axis=1)
    return jnp.concatenate([x[:, 1:], zero_col], axis=1)


def _lca_kernel(x_ref, w1_ref, b1_ref, w3_ref, b3_ref, w2_ref, b2_ref, o_ref):
    # x_ref / o_ref : (bb, C, L) NCW block.
    # w1_ref/w2_ref : (C, 3C) fused conv taps  [W_k0 | W_k1 | W_k2].
    # w3_ref        : (C, C) 1x1 conv.   b*_ref: (C, 1) float32.
    bb = x_ref.shape[0]
    mdt = w1_ref.dtype                       # MXU operand dtype (f32 or bf16)

    # Hoist weight/bias loads out of the per-batch loop.
    w1 = w1_ref[...]
    w2 = w2_ref[...]
    w3 = w3_ref[...]
    b1 = b1_ref[...]
    b2 = b2_ref[...]
    b3 = b3_ref[...]

    def conv3(v32, w_cat, bias):
        # out = W0 @ x[l-1] + W1 @ x[l] + W2 @ x[l+1] + b, as a single matmul.
        v = v32.astype(mdt)
        stack = jnp.concatenate([_shift1(v, 1), v, _shift1(v, -1)], axis=0)  # (3C, L)
        out = jnp.dot(w_cat, stack, preferred_element_type=jnp.float32)
        return out + bias                                                    # (C, L) f32

    for b in range(bb):                      # static unroll over batch in this block
        x32 = x_ref[b].astype(jnp.float32)                       # (C, L)

        # proj_1 + leaky_relu (negative_slope = 0.01)
        x1 = conv3(x32, w1, b1)
        x1 = jnp.where(x1 > 0, x1, 0.01 * x1)

        # proj_3: AdaptiveAvgPool1d(1) -> Conv1d(k=1) == mean over L, then (C,C)@(C,1)
        avg = jnp.mean(x1, axis=1, keepdims=True)                # (C, 1) f32
        gate = jnp.dot(w3, avg.astype(mdt),
                       preferred_element_type=jnp.float32) + b3  # (C, 1) f32

        # channel gating, proj_2, residual
        y = conv3(x1 * gate, w2, b2)
        o_ref[b] = (x32 + y).astype(o_ref.dtype)


def lca_forward(x, w1, b1, w2, b2, w3, b3, *,
                matmul_dtype=jnp.float32, batch_block=None):
    """x: (B, C, L) NCW; weights in PyTorch Conv1d layout (C_out, C_in, K)."""
    B, C, L = x.shape
    bb = B if batch_block is None else batch_block
    assert B % bb == 0, "batch_block must divide B"
    mdt = jnp.dtype(matmul_dtype)

    # Fuse the three taps into one (C, 3C) matrix (done once in XLA); the kernel
    # stacks [x[l-1]; x[l]; x[l+1]] along channels so each conv is one K=3C matmul.
    w1_cat = jnp.concatenate([w1[:, :, 0], w1[:, :, 1], w1[:, :, 2]], axis=1).astype(mdt)
    w2_cat = jnp.concatenate([w2[:, :, 0], w2[:, :, 1], w2[:, :, 2]], axis=1).astype(mdt)
    w3_m = w3[:, :, 0].astype(mdt)
    b1_r = b1.reshape(C, 1).astype(jnp.float32)
    b2_r = b2.reshape(C, 1).astype(jnp.float32)
    b3_r = b3.reshape(C, 1).astype(jnp.float32)

    const = lambda shape: pl.BlockSpec(shape, lambda g: (0,) * len(shape))

    # VMEM budget: double-buffered in/out blocks + weights + live f32 temporaries.
    x_itm = jnp.dtype(x.dtype).itemsize
    est = (2 * 2 * bb * C * L * x_itm                      # x + out, double buffered
           + 2 * (7 * C * C * mdt.itemsize + 3 * C * 4)    # fused weights + biases
           + 18 * C * L * 4)                               # (C,L)/(3C,L) temporaries
    vmem_limit = int(min(max(est + (8 << 20), 32 << 20), 48 << 20))

    return pl.pallas_call(
        _lca_kernel,
        out_shape=jax.ShapeDtypeStruct((B, C, L), x.dtype),
        grid_spec=pltpu.PrefetchScalarGridSpec(
            num_scalar_prefetch=0,
            grid=(B // bb,),
            in_specs=[
                pl.BlockSpec((bb, C, L), lambda g: (g, 0, 0)),   # x (NCW)
                const((C, 3 * C)),                               # fused w1 taps
                const((C, 1)),                                   # b1
                const((C, C)),                                   # w3 (1x1 conv)
                const((C, 1)),                                   # b3
                const((C, 3 * C)),                               # fused w2 taps
                const((C, 1)),                                   # b2
            ],
            out_specs=pl.BlockSpec((bb, C, L), lambda g: (g, 0, 0)),
        ),
        compiler_params=pltpu.CompilerParams(
            dimension_semantics=("parallel",),
            vmem_limit_bytes=vmem_limit),
    )(x, w1_cat, b1_r, w3_m, b3_r, w2_cat, b2_r)


def lca_reference(x, w1, b1, w2, b2, w3, b3):
    """Pure-JAX reference matching PyTorch semantics (NCW conv1d)."""
    def conv1d(inp, w, b, pad):
        out = lax.conv_general_dilated(
            inp, w, window_strides=(1,), padding=[(pad, pad)],
            dimension_numbers=("NCH", "OIH", "NCH"))
        return out + b[None, :, None]

    x1 = conv1d(x, w1, b1, 1)
    x1 = jnp.where(x1 > 0, x1, 0.01 * x1)
    y = jnp.mean(x1, axis=2, keepdims=True)        # AdaptiveAvgPool1d(1)
    y = conv1d(y, w3, b3, 0)
    y = x1 * y
    y = conv1d(y, w2, b2, 1)
    return x + y


if __name__ == "__main__":
    B, C, L = 2, 32, 128    # batch, d_model, sequence length (lane-aligned L)
    key = jax.random.PRNGKey(0)
    ks = jax.random.split(key, 7)

    x = jax.random.normal(ks[0], (B, C, L), jnp.float32)
    scale = 0.1
    w1 = scale * jax.random.normal(ks[1], (C, C, 3), jnp.float32)
    b1 = scale * jax.random.normal(ks[2], (C,), jnp.float32)
    w2 = scale * jax.random.normal(ks[3], (C, C, 3), jnp.float32)
    b2 = scale * jax.random.normal(ks[4], (C,), jnp.float32)
    w3 = scale * jax.random.normal(ks[5], (C, C, 1), jnp.float32)
    b3 = scale * jax.random.normal(ks[6], (C,), jnp.float32)

    ref = jax.block_until_ready(lca_reference(x, w1, b1, w2, b2, w3, b3))

    # f32 MXU-operand path: tight tolerance vs. pure-JAX reference.
    out = jax.block_until_ready(lca_forward(x, w1, b1, w2, b2, w3, b3))
    assert out.shape == (B, C, L)
    assert jnp.allclose(out, ref, atol=1e-4, rtol=1e-4), float(
        jnp.max(jnp.abs(out - ref)))

    # bf16 MXU-operand path (v6e/v7x fast path); looser tolerance due to
    # operand rounding — all element-wise math stays in f32 inside the kernel.
    out_bf16 = jax.block_until_ready(
        lca_forward(x, w1, b1, w2, b2, w3, b3, matmul_dtype=jnp.bfloat16))
    assert jnp.allclose(out_bf16, ref, atol=5e-2, rtol=5e-2), float(
        jnp.max(jnp.abs(out_bf16 - ref)))

    print("KERNEL_OK")
</pallas_src>

<mosaic_0001>
module attributes {stable_mosaic.version = 11 : i64} {
  func.func @_lca_kernel(%arg0: i32, %arg1: memref<2x32x128xf32, #tpu.memory_space<vmem>>, %arg2: memref<32x96xf32, #tpu.memory_space<vmem>>, %arg3: memref<32x1xf32, #tpu.memory_space<vmem>>, %arg4: memref<32x32xf32, #tpu.memory_space<vmem>>, %arg5: memref<32x1xf32, #tpu.memory_space<vmem>>, %arg6: memref<32x96xf32, #tpu.memory_space<vmem>>, %arg7: memref<32x1xf32, #tpu.memory_space<vmem>>, %arg8: memref<2x32x128xf32, #tpu.memory_space<vmem>>) attributes {dimension_semantics = [#tpu.dimension_semantics<parallel>], iteration_bounds = array<i64: 1>, scalar_prefetch = 0 : i64, scratch_operands = 0 : i64, tpu.core_type = #tpu.core_type<tc>, window_params = [{transform_indices = @transform_0, window_bounds = array<i64: 2, 32, 128>}, {pipeline_mode = #tpu.pipeline_mode<synchronous>, transform_indices = @transform_1, window_bounds = array<i64: 32, 96>}, {pipeline_mode = #tpu.pipeline_mode<synchronous>, transform_indices = @transform_2, window_bounds = array<i64: 32, 1>}, {pipeline_mode = #tpu.pipeline_mode<synchronous>, transform_indices = @transform_3, window_bounds = array<i64: 32, 32>}, {pipeline_mode = #tpu.pipeline_mode<synchronous>, transform_indices = @transform_4, window_bounds = array<i64: 32, 1>}, {pipeline_mode = #tpu.pipeline_mode<synchronous>, transform_indices = @transform_5, window_bounds = array<i64: 32, 96>}, {pipeline_mode = #tpu.pipeline_mode<synchronous>, transform_indices = @transform_6, window_bounds = array<i64: 32, 1>}, {transform_indices = @transform_7, window_bounds = array<i64: 2, 32, 128>}]} {
    %c0 = arith.constant 0 : index
    %c0_0 = arith.constant 0 : index
    %0 = vector.load %arg2[%c0, %c0_0] : memref<32x96xf32, #tpu.memory_space<vmem>>, vector<32x96xf32>
    %c0_1 = arith.constant 0 : index
    %c0_2 = arith.constant 0 : index
    %1 = vector.load %arg6[%c0_1, %c0_2] : memref<32x96xf32, #tpu.memory_space<vmem>>, vector<32x96xf32>
    %c0_3 = arith.constant 0 : index
    %c0_4 = arith.constant 0 : index
    %2 = vector.load %arg4[%c0_3, %c0_4] : memref<32x32xf32, #tpu.memory_space<vmem>>, vector<32x32xf32>
    %c0_5 = arith.constant 0 : index
    %c0_6 = arith.constant 0 : index
    %3 = vector.load %arg3[%c0_5, %c0_6] : memref<32x1xf32, #tpu.memory_space<vmem>>, vector<32x1xf32>
    %c0_7 = arith.constant 0 : index
    %c0_8 = arith.constant 0 : index
    %4 = vector.load %arg7[%c0_7, %c0_8] : memref<32x1xf32, #tpu.memory_space<vmem>>, vector<32x1xf32>
    %c0_9 = arith.constant 0 : index
    %c0_10 = arith.constant 0 : index
    %5 = vector.load %arg5[%c0_9, %c0_10] : memref<32x1xf32, #tpu.memory_space<vmem>>, vector<32x1xf32>
    %c0_11 = arith.constant 0 : index
    %c0_12 = arith.constant 0 : index
    %c0_13 = arith.constant 0 : index
    %6 = vector.load %arg1[%c0_11, %c0_12, %c0_13] : memref<2x32x128xf32, #tpu.memory_space<vmem>>, vector<1x32x128xf32>
    %7 = vector.shape_cast %6 : vector<1x32x128xf32> to vector<32x128xf32>
    %8 = tpu.iota {dimensions = array<i32: 1>} : vector<1x128xi32>
    %c1_i32 = arith.constant 1 : i32
    %9 = tpu.dynamic_rotate %7 by %c1_i32 dim 1 : vector<32x128xf32>, i32 -> vector<32x128xf32>
    %c0_i32 = arith.constant 0 : i32
    %10 = vector.broadcast %c0_i32 : i32 to vector<1x128xi32>
    %11 = arith.cmpi eq, %8, %10 : vector<1x128xi32>
    %cst = arith.constant 0.000000e+00 : f32
    %12 = vector.broadcast %cst : f32 to vector<32x128xf32>
    %13 = vector.shape_cast %11 : vector<1x128xi1> to vector<1x128xi1>
    %14 = vector.broadcast %13 : vector<1x128xi1> to vector<32x128xi1>
    %15 = arith.select %14, %12, %9 : vector<32x128xi1>, vector<32x128xf32>
    %16 = tpu.iota {dimensions = array<i32: 1>} : vector<1x128xi32>
    %c127_i32 = arith.constant 127 : i32
    %17 = tpu.dynamic_rotate %7 by %c127_i32 dim 1 : vector<32x128xf32>, i32 -> vector<32x128xf32>
    %c127_i32_14 = arith.constant 127 : i32
    %18 = vector.broadcast %c127_i32_14 : i32 to vector<1x128xi32>
    %19 = arith.cmpi eq, %16, %18 : vector<1x128xi32>
    %cst_15 = arith.constant 0.000000e+00 : f32
    %20 = vector.broadcast %cst_15 : f32 to vector<32x128xf32>
    %21 = vector.shape_cast %19 : vector<1x128xi1> to vector<1x128xi1>
    %22 = vector.broadcast %21 : vector<1x128xi1> to vector<32x128xi1>
    %23 = arith.select %22, %20, %17 : vector<32x128xi1>, vector<32x128xf32>
    %24 = tpu.concatenate %15, %7, %23 in 0 : vector<32x128xf32>, vector<32x128xf32>, vector<32x128xf32> -> vector<96x128xf32>
    %cst_16 = arith.constant dense<0.000000e+00> : vector<32x128xf32>
    %25 = tpu.matmul %0, %24, %cst_16 {dimension_numbers = #tpu.dot_dimension_numbers<[1], [0], [0], [1], [0, 0, 1, 1], [], []>} : vector<32x96xf32>, vector<96x128xf32>, vector<32x128xf32> -> vector<32x128xf32>
    %26 = vector.broadcast %3 : vector<32x1xf32> to vector<32x128xf32>
    %27 = arith.addf %25, %26 : vector<32x128xf32>
    %cst_17 = arith.constant 0.000000e+00 : f32
    %28 = vector.broadcast %cst_17 : f32 to vector<32x128xf32>
    %29 = arith.cmpf ogt, %27, %28 : vector<32x128xf32>
    %cst_18 = arith.constant 0.00999999977 : f32
    %30 = vector.broadcast %cst_18 : f32 to vector<32x128xf32>
    %31 = arith.mulf %30, %27 : vector<32x128xf32>
    %32 = arith.select %29, %27, %31 : vector<32x128xi1>, vector<32x128xf32>
    %cst_19 = arith.constant dense<0.000000e+00> : vector<32xf32>
    %33 = vector.multi_reduction <add>, %32, %cst_19 [1] : vector<32x128xf32> to vector<32xf32>
    %34 = vector.shape_cast %33 : vector<32xf32> to vector<32x1xf32>
    %cst_20 = arith.constant 1.280000e+02 : f32
    %35 = vector.broadcast %cst_20 : f32 to vector<32x1xf32>
    %36 = arith.divf %34, %35 : vector<32x1xf32>
    %cst_21 = arith.constant dense<0.000000e+00> : vector<32x1xf32>
    %37 = tpu.matmul %2, %36, %cst_21 {dimension_numbers = #tpu.dot_dimension_numbers<[1], [0], [0], [1], [0, 0, 1, 1], [], []>} : vector<32x32xf32>, vector<32x1xf32>, vector<32x1xf32> -> vector<32x1xf32>
    %38 = arith.addf %37, %5 : vector<32x1xf32>
    %39 = vector.broadcast %38 : vector<32x1xf32> to vector<32x128xf32>
    %40 = arith.mulf %32, %39 : vector<32x128xf32>
    %41 = tpu.iota {dimensions = array<i32: 1>} : vector<1x128xi32>
    %c1_i32_22 = arith.constant 1 : i32
    %42 = tpu.dynamic_rotate %40 by %c1_i32_22 dim 1 : vector<32x128xf32>, i32 -> vector<32x128xf32>
    %c0_i32_23 = arith.constant 0 : i32
    %43 = vector.broadcast %c0_i32_23 : i32 to vector<1x128xi32>
    %44 = arith.cmpi eq, %41, %43 : vector<1x128xi32>
    %cst_24 = arith.constant 0.000000e+00 : f32
    %45 = vector.broadcast %cst_24 : f32 to vector<32x128xf32>
    %46 = vector.shape_cast %44 : vector<1x128xi1> to vector<1x128xi1>
    %47 = vector.broadcast %46 : vector<1x128xi1> to vector<32x128xi1>
    %48 = arith.select %47, %45, %42 : vector<32x128xi1>, vector<32x128xf32>
    %49 = tpu.iota {dimensions = array<i32: 1>} : vector<1x128xi32>
    %c127_i32_25 = arith.constant 127 : i32
    %50 = tpu.dynamic_rotate %40 by %c127_i32_25 dim 1 : vector<32x128xf32>, i32 -> vector<32x128xf32>
    %c127_i32_26 = arith.constant 127 : i32
    %51 = vector.broadcast %c127_i32_26 : i32 to vector<1x128xi32>
    %52 = arith.cmpi eq, %49, %51 : vector<1x128xi32>
    %cst_27 = arith.constant 0.000000e+00 : f32
    %53 = vector.broadcast %cst_27 : f32 to vector<32x128xf32>
    %54 = vector.shape_cast %52 : vector<1x128xi1> to vector<1x128xi1>
    %55 = vector.broadcast %54 : vector<1x128xi1> to vector<32x128xi1>
    %56 = arith.select %55, %53, %50 : vector<32x128xi1>, vector<32x128xf32>
    %57 = tpu.concatenate %48, %40, %56 in 0 : vector<32x128xf32>, vector<32x128xf32>, vector<32x128xf32> -> vector<96x128xf32>
    %cst_28 = arith.constant dense<0.000000e+00> : vector<32x128xf32>
    %58 = tpu.matmul %1, %57, %cst_28 {dimension_numbers = #tpu.dot_dimension_numbers<[1], [0], [0], [1], [0, 0, 1, 1], [], []>} : vector<32x96xf32>, vector<96x128xf32>, vector<32x128xf32> -> vector<32x128xf32>
    %59 = vector.broadcast %4 : vector<32x1xf32> to vector<32x128xf32>
    %60 = arith.addf %58, %59 : vector<32x128xf32>
    %61 = arith.addf %7, %60 : vector<32x128xf32>
    %c0_29 = arith.constant 0 : index
    %c0_30 = arith.constant 0 : index
    %c0_31 = arith.constant 0 : index
    %62 = vector.load %arg8[%c0_29, %c0_30, %c0_31] : memref<2x32x128xf32, #tpu.memory_space<vmem>>, vector<1x32x128xf32>
    %63 = vector.shape_cast %62 : vector<1x32x128xf32> to vector<32x128xf32>
    %64 = vector.shape_cast %61 : vector<32x128xf32> to vector<1x32x128xf32>
    tpu.vector_store %arg8[%c0_29, %c0_30, %c0_31], %64 {strides = array<i32>} : memref<2x32x128xf32, #tpu.memory_space<vmem>>, vector<1x32x128xf32>,
    %c1 = arith.constant 1 : index
    %c0_32 = arith.constant 0 : index
    %c0_33 = arith.constant 0 : index
    %65 = vector.load %arg1[%c1, %c0_32, %c0_33] : memref<2x32x128xf32, #tpu.memory_space<vmem>>, vector<1x32x128xf32>
    %66 = vector.shape_cast %65 : vector<1x32x128xf32> to vector<32x128xf32>
    %67 = tpu.iota {dimensions = array<i32: 1>} : vector<1x128xi32>
    %c1_i32_34 = arith.constant 1 : i32
    %68 = tpu.dynamic_rotate %66 by %c1_i32_34 dim 1 : vector<32x128xf32>, i32 -> vector<32x128xf32>
    %c0_i32_35 = arith.constant 0 : i32
    %69 = vector.broadcast %c0_i32_35 : i32 to vector<1x128xi32>
    %70 = arith.cmpi eq, %67, %69 : vector<1x128xi32>
    %cst_36 = arith.constant 0.000000e+00 : f32
    %71 = vector.broadcast %cst_36 : f32 to vector<32x128xf32>
    %72 = vector.shape_cast %70 : vector<1x128xi1> to vector<1x128xi1>
    %73 = vector.broadcast %72 : vector<1x128xi1> to vector<32x128xi1>
    %74 = arith.select %73, %71, %68 : vector<32x128xi1>, vector<32x128xf32>
    %75 = tpu.iota {dimensions = array<i32: 1>} : vector<1x128xi32>
    %c127_i32_37 = arith.constant 127 : i32
    %76 = tpu.dynamic_rotate %66 by %c127_i32_37 dim 1 : vector<32x128xf32>, i32 -> vector<32x128xf32>
    %c127_i32_38 = arith.constant 127 : i32
    %77 = vector.broadcast %c127_i32_38 : i32 to vector<1x128xi32>
    %78 = arith.cmpi eq, %75, %77 : vector<1x128xi32>
    %cst_39 = arith.constant 0.000000e+00 : f32
    %79 = vector.broadcast %cst_39 : f32 to vector<32x128xf32>
    %80 = vector.shape_cast %78 : vector<1x128xi1> to vector<1x128xi1>
    %81 = vector.broadcast %80 : vector<1x128xi1> to vector<32x128xi1>
    %82 = arith.select %81, %79, %76 : vector<32x128xi1>, vector<32x128xf32>
    %83 = tpu.concatenate %74, %66, %82 in 0 : vector<32x128xf32>, vector<32x128xf32>, vector<32x128xf32> -> vector<96x128xf32>
    %cst_40 = arith.constant dense<0.000000e+00> : vector<32x128xf32>
    %84 = tpu.matmul %0, %83, %cst_40 {dimension_numbers = #tpu.dot_dimension_numbers<[1], [0], [0], [1], [0, 0, 1, 1], [], []>} : vector<32x96xf32>, vector<96x128xf32>, vector<32x128xf32> -> vector<32x128xf32>
    %85 = vector.broadcast %3 : vector<32x1xf32> to vector<32x128xf32>
    %86 = arith.addf %84, %85 : vector<32x128xf32>
    %cst_41 = arith.constant 0.000000e+00 : f32
    %87 = vector.broadcast %cst_41 : f32 to vector<32x128xf32>
    %88 = arith.cmpf ogt, %86, %87 : vector<32x128xf32>
    %cst_42 = arith.constant 0.00999999977 : f32
    %89 = vector.broadcast %cst_42 : f32 to vector<32x128xf32>
    %90 = arith.mulf %89, %86 : vector<32x128xf32>
    %91 = arith.select %88, %86, %90 : vector<32x128xi1>, vector<32x128xf32>
    %cst_43 = arith.constant dense<0.000000e+00> : vector<32xf32>
    %92 = vector.multi_reduction <add>, %91, %cst_43 [1] : vector<32x128xf32> to vector<32xf32>
    %93 = vector.shape_cast %92 : vector<32xf32> to vector<32x1xf32>
    %cst_44 = arith.constant 1.280000e+02 : f32
    %94 = vector.broadcast %cst_44 : f32 to vector<32x1xf32>
    %95 = arith.divf %93, %94 : vector<32x1xf32>
    %cst_45 = arith.constant dense<0.000000e+00> : vector<32x1xf32>
    %96 = tpu.matmul %2, %95, %cst_45 {dimension_numbers = #tpu.dot_dimension_numbers<[1], [0], [0], [1], [0, 0, 1, 1], [], []>} : vector<32x32xf32>, vector<32x1xf32>, vector<32x1xf32> -> vector<32x1xf32>
    %97 = arith.addf %96, %5 : vector<32x1xf32>
    %98 = vector.broadcast %97 : vector<32x1xf32> to vector<32x128xf32>
    %99 = arith.mulf %91, %98 : vector<32x128xf32>
    %100 = tpu.iota {dimensions = array<i32: 1>} : vector<1x128xi32>
    %c1_i32_46 = arith.constant 1 : i32
    %101 = tpu.dynamic_rotate %99 by %c1_i32_46 dim 1 : vector<32x128xf32>, i32 -> vector<32x128xf32>
    %c0_i32_47 = arith.constant 0 : i32
    %102 = vector.broadcast %c0_i32_47 : i32 to vector<1x128xi32>
    %103 = arith.cmpi eq, %100, %102 : vector<1x128xi32>
    %cst_48 = arith.constant 0.000000e+00 : f32
    %104 = vector.broadcast %cst_48 : f32 to vector<32x128xf32>
    %105 = vector.shape_cast %103 : vector<1x128xi1> to vector<1x128xi1>
    %106 = vector.broadcast %105 : vector<1x128xi1> to vector<32x128xi1>
    %107 = arith.select %106, %104, %101 : vector<32x128xi1>, vector<32x128xf32>
    %108 = tpu.iota {dimensions = array<i32: 1>} : vector<1x128xi32>
    %c127_i32_49 = arith.constant 127 : i32
    %109 = tpu.dynamic_rotate %99 by %c127_i32_49 dim 1 : vector<32x128xf32>, i32 -> vector<32x128xf32>
    %c127_i32_50 = arith.constant 127 : i32
    %110 = vector.broadcast %c127_i32_50 : i32 to vector<1x128xi32>
    %111 = arith.cmpi eq, %108, %110 : vector<1x128xi32>
    %cst_51 = arith.constant 0.000000e+00 : f32
    %112 = vector.broadcast %cst_51 : f32 to vector<32x128xf32>
    %113 = vector.shape_cast %111 : vector<1x128xi1> to vector<1x128xi1>
    %114 = vector.broadcast %113 : vector<1x128xi1> to vector<32x128xi1>
    %115 = arith.select %114, %112, %109 : vector<32x128xi1>, vector<32x128xf32>
    %116 = tpu.concatenate %107, %99, %115 in 0 : vector<32x128xf32>, vector<32x128xf32>, vector<32x128xf32> -> vector<96x128xf32>
    %cst_52 = arith.constant dense<0.000000e+00> : vector<32x128xf32>
    %117 = tpu.matmul %1, %116, %cst_52 {dimension_numbers = #tpu.dot_dimension_numbers<[1], [0], [0], [1], [0, 0, 1, 1], [], []>} : vector<32x96xf32>, vector<96x128xf32>, vector<32x128xf32> -> vector<32x128xf32>
    %118 = vector.broadcast %4 : vector<32x1xf32> to vector<32x128xf32>
    %119 = arith.addf %117, %118 : vector<32x128xf32>
    %120 = arith.addf %66, %119 : vector<32x128xf32>
    %c1_53 = arith.constant 1 : index
    %c0_54 = arith.constant 0 : index
    %c0_55 = arith.constant 0 : index
    %121 = vector.load %arg8[%c1_53, %c0_54, %c0_55] : memref<2x32x128xf32, #tpu.memory_space<vmem>>, vector<1x32x128xf32>
    %122 = vector.shape_cast %121 : vector<1x32x128xf32> to vector<32x128xf32>
    %123 = vector.shape_cast %120 : vector<32x128xf32> to vector<1x32x128xf32>
    tpu.vector_store %arg8[%c1_53, %c0_54, %c0_55], %123 {strides = array<i32>} : memref<2x32x128xf32, #tpu.memory_space<vmem>>, vector<1x32x128xf32>,
    return
  }
  func.func @transform_0(%arg0: i32) -> (i32, i32, i32) {
    %c0_i32 = arith.constant 0 : i32
    %c0_i32_0 = arith.constant 0 : i32
    %c0_i32_1 = arith.constant 0 : i32
    return %arg0, %c0_i32, %c0_i32_0 : i32, i32, i32
  }
  func.func @transform_1(%arg0: i32) -> (i32, i32) {
    %c0_i32 = arith.constant 0 : i32
    %c0_i32_0 = arith.constant 0 : i32
    %c0_i32_1 = arith.constant 0 : i32
    return %c0_i32, %c0_i32_0 : i32, i32
  }
  func.func @transform_2(%arg0: i32) -> (i32, i32) {
    %c0_i32 = arith.constant 0 : i32
    %c0_i32_0 = arith.constant 0 : i32
    %c0_i32_1 = arith.constant 0 : i32
    return %c0_i32, %c0_i32_0 : i32, i32
  }
  func.func @transform_3(%arg0: i32) -> (i32, i32) {
    %c0_i32 = arith.constant 0 : i32
    %c0_i32_0 = arith.constant 0 : i32
    %c0_i32_1 = arith.constant 0 : i32
    return %c0_i32, %c0_i32_0 : i32, i32
  }
  func.func @transform_4(%arg0: i32) -> (i32, i32) {
    %c0_i32 = arith.constant 0 : i32
    %c0_i32_0 = arith.constant 0 : i32
    %c0_i32_1 = arith.constant 0 : i32
    return %c0_i32, %c0_i32_0 : i32, i32
  }
  func.func @transform_5(%arg0: i32) -> (i32, i32) {
    %c0_i32 = arith.constant 0 : i32
    %c0_i32_0 = arith.constant 0 : i32
    %c0_i32_1 = arith.constant 0 : i32
    return %c0_i32, %c0_i32_0 : i32, i32
  }
  func.func @transform_6(%arg0: i32) -> (i32, i32) {
    %c0_i32 = arith.constant 0 : i32
    %c0_i32_0 = arith.constant 0 : i32
    %c0_i32_1 = arith.constant 0 : i32
    return %c0_i32, %c0_i32_0 : i32, i32
  }
  func.func @transform_7(%arg0: i32) -> (i32, i32, i32) {
    %c0_i32 = arith.constant 0 : i32
    %c0_i32_0 = arith.constant 0 : i32
    %c0_i32_1 = arith.constant 0 : i32
    return %arg0, %c0_i32, %c0_i32_0 : i32, i32, i32
  }
}

</mosaic_0001>

<bundles_post_ra>
// kernel: tpu_custom_call.1
= control target key start
LH: loop header
LB: loop body
LE: loop exit
PB: predicated region body
PF: predicated region fallthrough
CT: control target
= control target key end

     0   :  { %12 = vsyncpa [#allocation3], 0  ;;  %s1818_s0 = inlined_call_operand.vmem [shape: f32[2,32,128], index: 0, kind: input, shape index: {}]   ;;  %s1819_s1 = inlined_call_operand.vmem [shape: f32[32,96], index: 1, kind: input, shape index: {}]   ;;  %s1820_s2 = inlined_call_operand.vmem [shape: f32[32,1], index: 2, kind: input, shape index: {}]   ;;  %s1821_s3 = inlined_call_operand.hbm [shape: f32[32,32], index: 3, kind: input, shape index: {}]   ;;  %s1822_s4 = inlined_call_operand.vmem [shape: f32[32,1], index: 4, kind: input, shape index: {}]   ;;  %s1823_s5 = inlined_call_operand.hbm [shape: f32[32,96], index: 5, kind: input, shape index: {}]   ;;  %s1824_s6 = inlined_call_operand.vmem [shape: f32[32,1], index: 6, kind: input, shape index: {}]   ;;  %s1825_s7 = inlined_call_operand.hbm [shape: f32[2,32,128], index: 7, kind: output, shape index: {}]  }
   0x1   :  { %13 = vsyncpa [#allocation6], 0 }
   0x2   :  { %14 = vsyncpa [#allocation4], 0  ;;  %s1310_s24 = smov [#allocation2]  }
   0x3   :  { %s26_s25 = sshll.u32 %s1310_s24, 4  ;;  %s27_s25 = int_to_ptr.vmem [resolvable:$true] %s26_s25 }
   0x4   :  { %s1252_s26 = scalar_lea.vmem %s27_s25, 512  ;;  %p1257_p1 = scmp.lt.s32.totalorder %s27_s25, %s27_s25 }
   0x5   :  { %p1253_p0 = scmp.ne.s32.totalorder %s27_s25, %s1252_s26  ;;  %p1258_p2 = scmp.lt.s32.totalorder %s1252_s26, %s1252_s26 }
   0x7   :  { %p1259_p3 = por %p1258_p2, %p1257_p1 }
   0x9   :  { %p1260_p4 = pnand %p1259_p3, %p1253_p0 }
   0xb   :  { %1263 = shalt.err (!%p1260_p4)
}
   0xc   :  { %s1311_s27 = smov 128   ;;  %s1312_s28 = smov 8  }
   0xd   :  { %32 = dma.hbm_to_vmem [thread:$0]  %s1821_s3, 512, %s27_s25, [#allocation3], %s1311_s27, %s1311_s27, %s1312_s28  }
   0xe   :  { %s1313_s8 = smov [#allocation5]  }
   0xf   :  { %s40_s9 = sshll.u32 %s1313_s8, 4  ;;  %s41_s9 = int_to_ptr.vmem [resolvable:$true] %s40_s9 }
  0x10   :  { %s1272_s10 = scalar_lea.vmem %s41_s9, 512  ;;  %p1277_p6 = scmp.lt.s32.totalorder %s41_s9, %s41_s9 }
  0x11   :  { %p1273_p5 = scmp.ne.s32.totalorder %s41_s9, %s1272_s10  ;;  %p1278_p7 = scmp.lt.s32.totalorder %s1272_s10, %s1272_s10 }
  0x13   :  { %p1279_p8 = por %p1278_p7, %p1277_p6 }
  0x15   :  { %p1280_p9 = pnand %p1279_p8, %p1273_p5 }
  0x17   :  { %1283 = shalt.err (!%p1280_p9)
}
  0x18   :  { %46 = dma.hbm_to_vmem [thread:$0]  %s1823_s5, 512, %s41_s9, [#allocation6], %s1311_s27, %s1311_s27, %s1312_s28  }
  0x19   :  { %1304 = dma.done.wait [#allocation3], 512  }
  0x1a   :  { %1305 = vsyncadd [#allocation3], 4294966784 }
  0x1b   :  { %1306 = dma.done.wait [#allocation6], 512  }
  0x1c   :  { %1307 = vsyncadd [#allocation6], 4294966784  ;;  %v1373_v0 = vld [vmem:[%s1818_s0 + $0x18] sm:$0xff]  ;;  %v1378_v1 = vld [vmem:[%s1818_s0 + $0x8] sm:$0xff]  ;;  %s1314_s16 = smov 127   ;;  %s1315_s20 = smov 1   ;;  %v83_v10 = vlaneseq }
  0x1d   :  { %106 = vrot.lane.b32.xlu0 %v1373_v0, %s1314_s16  ;;  %102 = vrot.lane.b32.xlu1 %v1378_v1, %s1314_s16  ;;  %v1387_v2 = vld [vmem:[%s1818_s0 + $0x10] sm:$0xff]  ;;  %v1392_v3 = vld [vmem:[%s1818_s0] sm:$0xff]  ;;  %vm135_vm0 = vcmask 785408   ;;  %v1316_v7 = vmov 0   ;;  %vm258_vm7 = vcmask 261120   ;;  %v1554_v58 = vld [vmem:[#allocation2 + $0x8] sm:$0xff] }
  0x1e   :  { %v1405_v4 = vld [vmem:[%s1819_s1] sm:$0xff]  ;;  %v69_v5 = vld [vmem:[%s1820_s2 + $0x10] sm:$0xff]  ;;  %v70_v6 = vld [vmem:[%s1820_s2 + $0x18] sm:$0xff]  ;;  %1243 = vset.pattern.permute.xlu1 %v1316_v7  ;;  %1242 = vset.pattern.permute.xlu0 %v1316_v7  ;;  %v1425_v11 = vand.u32 127, %v83_v10 }
  0x1f   :  { %1110 = vmatprep.mubr.msk.f32.mxu0 %vm135_vm0, %v1405_v4  ;;  %v68_v8 = vld [vmem:[%s1820_s2 + $0x8] sm:$0xff]  ;;  %v67_v9 = vld [vmem:[%s1820_s2] sm:$0xff]  ;;  %v1475_v21 = vld [vmem:[%s1819_s1 + $0x10] sm:$0xff] }
  0x20   :  { %vm1004_vm1 = vcmp.ne.s32.totalorder %v1425_v11, 127  ;;  %vm1005_vm2 = vcmp.ne.s32.totalorder %v1425_v11, 0  ;;  %v1468_v20 = vld [vmem:[%s1819_s1 + $0x8] sm:$0xff]  ;;  %v1486_v22 = vld [vmem:[%s1819_s1 + $0x18] sm:$0xff]  ;;  %v1517_v43 = vld [vmem:[%s1818_s0 + $0x30] sm:$0xff] }
  0x21   :  { %104 = vrot.lane.b32.xlu0 %v1387_v2, %s1314_s16  ;;  %100 = vrot.lane.b32.xlu1 %v1392_v3, %s1314_s16  ;;  %v1519_v44 = vld [vmem:[#allocation2] sm:$0xff]  ;;  %v1528_v45 = vld [vmem:[%s1818_s0 + $0x28] sm:$0xff]  ;;  %v1533_v46 = vld [vmem:[%s1818_s0 + $0x38] sm:$0xff] }
  0x22   :  { %v1542_v47 = vld [vmem:[%s1818_s0 + $0x20] sm:$0xff]  ;;  %v1556_v59 = vld [vmem:[#allocation2 + $0x10] sm:$0xff]  ;;  %v1566_v61 = vld [vmem:[#allocation2 + $0x18] sm:$0xff] }
  0x23   :  { %v1622_v10 = vld [vmem:[%s1822_s4 + $0x18] sm:$0xff] }
  0x25   :  { %91 = vrot.lane.b32.xlu0 %v1373_v0, %s1315_s20  ;;  %89 = vrot.lane.b32.xlu1 %v1387_v2, %s1315_s20 }
  0x29   :  { %87 = vrot.lane.b32.xlu0 %v1378_v1, %s1315_s20  ;;  %85 = vrot.lane.b32.xlu1 %v1392_v3, %s1315_s20 }
  0x2d   :  { %127 = vperm.xlu1 %1243, %v69_v5   ;;  %132 = vperm.xlu0 %1242, %v70_v6  }
  0x31   :  { %122 = vperm.xlu1 %1243, %v68_v8   ;;  %117 = vperm.xlu0 %1242, %v67_v9   ;;  %v1617_v8 = vld [vmem:[%s1822_s4] sm:$0xff] }
  0x8f   :  { %v107_v12 = vpop.permute.xlu0 %106  ;;  %v103_v13 = vpop.permute.xlu1 %102 }
  0x90   :  { %1086 = vmatprep.subr.msk.mxu0 %vm1004_vm1, %v107_v12 }
  0x91   :  { %1087 = vmatpush3.msk.msra.mxu0 %vm1004_vm1, %v107_v12 }
  0x93   :  { %v105_v14 = vpop.permute.xlu0 %104  ;;  %v101_v15 = vpop.permute.xlu1 %100 }
  0x94   :  { %1088 = vmatprep.subr.msk.mxu0 %vm1004_vm1, %v105_v14 }
  0x95   :  { %1089 = vmatpush3.msk.msra.mxu0 %vm1004_vm1, %v105_v14  ;;  %v1628_v14 = vld [vmem:[%s1822_s4 + $0x10] sm:$0xff] }
  0x96   :  { %1090 = vmatprep.subr.msk.mxu0 %vm1004_vm1, %v103_v13 }
  0x97   :  { %1091 = vmatpush3.msk.msra.mxu0 %vm1004_vm1, %v103_v13  ;;  %v92_v16 = vpop.permute.xlu0 %91  ;;  %v90_v17 = vpop.permute.xlu1 %89 }
  0x98   :  { %1092 = vmatprep.subr.msk.mxu0 %vm1004_vm1, %v101_v15 }
  0x99   :  { %1093 = vmatpush3.msk.msra.mxu0 %vm1004_vm1, %v101_v15 }
  0x9a   :  { %1094 = vmatprep.subr.mxu0 %v1373_v0 }
  0x9b   :  { %1095 = vmatpush3.msra.mxu0 %v1373_v0  ;;  %v88_v18 = vpop.permute.xlu0 %87  ;;  %v86_v19 = vpop.permute.xlu1 %85 }
  0x9c   :  { %1096 = vmatprep.subr.mxu0 %v1387_v2 }
  0x9d   :  { %1097 = vmatpush3.msra.mxu0 %v1387_v2 }
  0x9e   :  { %1098 = vmatprep.subr.mxu0 %v1378_v1 }
  0x9f   :  { %1099 = vmatpush3.msra.mxu0 %v1378_v1 }
  0xa0   :  { %1100 = vmatprep.subr.mxu0 %v1392_v3 }
  0xa1   :  { %1101 = vmatpush3.msra.mxu0 %v1392_v3 }
  0xa2   :  { %1102 = vmatprep.subr.msk.mxu0 %vm1005_vm2, %v92_v16 }
  0xa3   :  { %1103 = vmatpush3.msk.msra.mxu0 %vm1005_vm2, %v92_v16  ;;  %v1634_v16 = vld [vmem:[%s1822_s4 + $0x8] sm:$0xff] }
  0xa4   :  { %1104 = vmatprep.subr.msk.mxu0 %vm1005_vm2, %v90_v17 }
  0xa5   :  { %1105 = vmatpush3.msk.msra.mxu0 %vm1005_vm2, %v90_v17 }
  0xa6   :  { %1106 = vmatprep.subr.msk.mxu0 %vm1005_vm2, %v88_v18 }
  0xa7   :  { %1107 = vmatpush3.msk.msra.mxu0 %vm1005_vm2, %v88_v18 }
  0xa8   :  { %1108 = vmatprep.subr.msk.mxu0 %vm1005_vm2, %v86_v19  ;;  %v1490_v23 = vpop.permute.xlu0 %132  ;;  %v1492_v24 = vpop.permute.xlu1 %127 }
  0xa9   :  { %1109 = vmatpush3.msk.msra.mxu0 %vm1005_vm2, %v86_v19 }
  0xaa   :  { %1111 = vmatmul.mubr.msk.f32.vlgmr.msra.gmra.mxu0 %vm135_vm0, %v1468_v20 }
  0xab   :  { %1113 = vmatprep.mubr.msk.f32.mxu0 %vm135_vm0, %v1475_v21 }
  0xac   :  { %v1494_v26 = vpop.permute.xlu0 %117  ;;  %v1496_v28 = vpop.permute.xlu1 %122 }
  0xae   :  { %1114 = vmatmul.mubr.msk.f32.gmra.mxu0 %vm135_vm0, %v1486_v22 }
  0xaf   :  { %1124 = vmatprep.mubr.msk.f32.mxu0 %vm258_vm7, %v1519_v44 }
 0x16a   :  { %v1112_v25 = vpop.f32.mrf.mxu0 }
 0x16b   :  { %v220_v33 = vadd.f32 %v1112_v25, %v1496_v28 }
 0x16c   :  { %v214_v27 = vpop.f32.mrf.mxu0 }
 0x16d   :  { %v215_v30 = vadd.f32 %v214_v27, %v1494_v26  ;;  %v238_v40 = vmul.f32 0.01, %v220_v33  ;;  %vm234_vm6 = vcmp.gt.f32.partialorder %v220_v33, 0.0 }
 0x16e   :  { %v1115_v29 = vpop.f32.mrf.mxu0 }
 0x16f   :  { %v230_v31 = vadd.f32 %v1115_v29, %v1490_v23  ;;  %v237_v38 = vmul.f32 0.01, %v215_v30  ;;  %vm233_vm5 = vcmp.gt.f32.partialorder %v215_v30, 0.0  ;;  %v1511_v42 = vsel %vm234_vm6, %v220_v33, %v238_v40 }
 0x170   :  { %v224_v32 = vpop.f32.mrf.mxu0 }
 0x171   :  { %v225_v34 = vadd.f32 %v224_v32, %v1492_v24  ;;  %vm236_vm3 = vcmp.gt.f32.partialorder %v230_v31, 0.0  ;;  %v240_v35 = vmul.f32 0.01, %v230_v31  ;;  %v1508_v41 = vsel %vm233_vm5, %v215_v30, %v237_v38 }
 0x173   :  { %v1502_v36 = vsel %vm236_vm3, %v230_v31, %v240_v35  ;;  %vm235_vm4 = vcmp.gt.f32.partialorder %v225_v34, 0.0  ;;  %v239_v37 = vmul.f32 0.01, %v225_v34 }
 0x174   :  { %251 = vadd.xlane.f32.xlu1 %v1502_v36 }
 0x175   :  { %v1505_v39 = vsel %vm235_vm4, %v225_v34, %v239_v37 }
 0x176   :  { %249 = vadd.xlane.f32.xlu0 %v1505_v39 }
 0x178   :  { %245 = vadd.xlane.f32.xlu1 %v1508_v41 }
 0x17a   :  { %247 = vadd.xlane.f32.xlu0 %v1511_v42 }
 0x189   :  { %550 = vrot.lane.b32.xlu1 %v1517_v43, %s1314_s16 }
 0x18d   :  { %548 = vrot.lane.b32.xlu1 %v1528_v45, %s1314_s16 }
 0x190   :  { %552 = vrot.lane.b32.xlu0 %v1533_v46, %s1314_s16 }
 0x191   :  { %540 = vrot.lane.b32.xlu1 %v1533_v46, %s1315_s20 }
 0x194   :  { %546 = vrot.lane.b32.xlu0 %v1542_v47, %s1314_s16 }
 0x195   :  { %536 = vrot.lane.b32.xlu1 %v1528_v45, %s1315_s20 }
 0x198   :  { %538 = vrot.lane.b32.xlu0 %v1517_v43, %s1315_s20 }
 0x19c   :  { %534 = vrot.lane.b32.xlu0 %v1542_v47, %s1315_s20 }
 0x1fd   :  { %v252_v48 = vpop.xlane.xlu1 %251 }
 0x1fe   :  { %v257_v49 = vmul.f32 0.0078125, %v252_v48 }
 0x1ff   :  { %v250_v50 = vpop.xlane.xlu0 %249 }
 0x200   :  { %v256_v51 = vmul.f32 0.0078125, %v250_v50  ;;  %1116 = vmatprep.subr.mxu0 %v257_v49 }
 0x201   :  { %1117 = vmatpush3.msra.mxu0 %v257_v49  ;;  %v246_v52 = vpop.xlane.xlu1 %245 }
 0x202   :  { %1118 = vmatprep.subr.mxu0 %v256_v51  ;;  %v254_v56 = vmul.f32 0.0078125, %v246_v52 }
 0x203   :  { %1119 = vmatpush3.msra.mxu0 %v256_v51  ;;  %v248_v53 = vpop.xlane.xlu0 %247  ;;  %v59_v51 = vld [vmem:[#allocation5] sm:$0xff] }
 0x204   :  { %v255_v54 = vmul.f32 0.0078125, %v248_v53  ;;  %1154 = vmatprep.mubr.msk.f32.mxu1 %vm135_vm0, %v59_v51 }
 0x205   :  { %v551_v55 = vpop.permute.xlu1 %550 }
 0x206   :  { %1120 = vmatprep.subr.mxu0 %v255_v54 }
 0x207   :  { %1121 = vmatpush3.msra.mxu0 %v255_v54  ;;  %v553_v57 = vpop.permute.xlu0 %552 }
 0x208   :  { %1122 = vmatprep.subr.mxu0 %v254_v56 }
 0x209   :  { %1123 = vmatpush3.msra.mxu0 %v254_v56  ;;  %v549_v60 = vpop.permute.xlu1 %548 }
 0x20a   :  { %1125 = vmatmul.mubr.msk.f32.vlgmr.msra.gmra.mxu0 %vm258_vm7, %v1554_v58  ;;  %1160 = vmatprep.subr.msk.mxu0 %vm1004_vm1, %v553_v57 }
 0x20b   :  { %1161 = vmatpush3.msk.msra.mxu0 %vm1004_vm1, %v553_v57  ;;  %1127 = vmatprep.mubr.msk.f32.mxu0 %vm258_vm7, %v1556_v59  ;;  %v547_v62 = vpop.permute.xlu0 %546 }
 0x20c   :  { %1162 = vmatprep.subr.msk.mxu0 %vm1004_vm1, %v551_v55 }
 0x20d   :  { %1163 = vmatpush3.msk.msra.mxu0 %vm1004_vm1, %v551_v55  ;;  %v541_v63 = vpop.permute.xlu1 %540 }
 0x20e   :  { %1128 = vmatmul.mubr.msk.f32.gmra.mxu0 %vm258_vm7, %v1566_v61  ;;  %1164 = vmatprep.subr.msk.mxu0 %vm1004_vm1, %v549_v60 }
 0x20f   :  { %1165 = vmatpush3.msk.msra.mxu0 %vm1004_vm1, %v549_v60  ;;  %1184 = vmatprep.mubr.msk.f32.mxu0 %vm135_vm0, %v1405_v4  ;;  %v539_v4 = vpop.permute.xlu0 %538 }
 0x210   :  { %1166 = vmatprep.subr.msk.mxu0 %vm1004_vm1, %v547_v62 }
 0x211   :  { %1167 = vmatpush3.msk.msra.mxu0 %vm1004_vm1, %v547_v62  ;;  %v537_v5 = vpop.permute.xlu1 %536 }
 0x212   :  { %1168 = vmatprep.subr.mxu0 %v1533_v46 }
 0x213   :  { %1169 = vmatpush3.msra.mxu0 %v1533_v46  ;;  %v535_v6 = vpop.permute.xlu0 %534 }
 0x214   :  { %1170 = vmatprep.subr.mxu0 %v1517_v43 }
 0x215   :  { %1171 = vmatpush3.msra.mxu0 %v1517_v43 }
 0x216   :  { %1172 = vmatprep.subr.mxu0 %v1528_v45 }
 0x217   :  { %1173 = vmatpush3.msra.mxu0 %v1528_v45 }
 0x218   :  { %1174 = vmatprep.subr.mxu0 %v1542_v47 }
 0x219   :  { %1175 = vmatpush3.msra.mxu0 %v1542_v47 }
 0x21a   :  { %1176 = vmatprep.subr.msk.mxu0 %vm1005_vm2, %v541_v63 }
 0x21b   :  { %1177 = vmatpush3.msk.msra.mxu0 %vm1005_vm2, %v541_v63 }
 0x21c   :  { %1178 = vmatprep.subr.msk.mxu0 %vm1005_vm2, %v539_v4 }
 0x21d   :  { %1179 = vmatpush3.msk.msra.mxu0 %vm1005_vm2, %v539_v4 }
 0x21e   :  { %1180 = vmatprep.subr.msk.mxu0 %vm1005_vm2, %v537_v5 }
 0x21f   :  { %1181 = vmatpush3.msk.msra.mxu0 %vm1005_vm2, %v537_v5  ;;  %v1701_v5 = vld [vmem:[#allocation5 + $0x8] sm:$0xff] }
 0x220   :  { %1182 = vmatprep.subr.msk.mxu0 %vm1005_vm2, %v535_v6 }
 0x221   :  { %1183 = vmatpush3.msk.msra.mxu0 %vm1005_vm2, %v535_v6 }
 0x222   :  { %1185 = vmatmul.mubr.msk.f32.vlgmr.msra.gmra.mxu0 %vm135_vm0, %v1468_v20 }
 0x223   :  { %1187 = vmatprep.mubr.msk.f32.mxu0 %vm135_vm0, %v1475_v21 }
 0x226   :  { %1188 = vmatmul.mubr.msk.f32.gmra.mxu0 %vm135_vm0, %v1486_v22 }
 0x2ca   :  { %v1126_v7 = vpop.f32.mrf.mxu0 }
 0x2cb   :  { %v343_v19 = vadd.f32 %v1126_v7, %v1634_v16  ;;  %v1705_v7 = vld [vmem:[#allocation5 + $0x10] sm:$0xff] }
 0x2cc   :  { %v337_v9 = vpop.f32.mrf.mxu0 }
 0x2cd   :  { %v338_v12 = vadd.f32 %v337_v9, %v1617_v8 }
 0x2ce   :  { %v1129_v13 = vpop.f32.mrf.mxu0 }
 0x2cf   :  { %v353_v15 = vadd.f32 %v1129_v13, %v1622_v10  ;;  %358 = vperm.xlu0 %1242, %v338_v12   ;;  %v1713_v12 = vld [vmem:[#allocation5 + $0x18] sm:$0xff] }
 0x2d0   :  { %v347_v17 = vpop.f32.mrf.mxu0 }
 0x2d1   :  { %v348_v18 = vadd.f32 %v347_v17, %v1628_v14  ;;  %373 = vperm.xlu1 %1243, %v353_v15  }
 0x2d3   :  { %368 = vperm.xlu0 %1242, %v348_v18  }
 0x2d5   :  { %363 = vperm.xlu1 %1243, %v343_v19  }
 0x2e2   :  { %v1186_v29 = vpop.f32.mrf.mxu0 }
 0x2e3   :  { %v630_v35 = vadd.f32 %v1186_v29, %v1496_v28 }
 0x2e4   :  { %v624_v31 = vpop.f32.mrf.mxu0 }
 0x2e5   :  { %v648_v40 = vmul.f32 0.01, %v630_v35  ;;  %vm644_vm9 = vcmp.gt.f32.partialorder %v630_v35, 0.0 }
 0x2e6   :  { %v1189_v32 = vpop.f32.mrf.mxu0 }
 0x2e8   :  { %v634_v33 = vpop.f32.mrf.mxu0 }
 0x2e9   :  { %v635_v34 = vadd.f32 %v634_v33, %v1492_v24 }
 0x2eb   :  { %v649_v37 = vmul.f32 0.01, %v635_v34  ;;  %vm645_vm8 = vcmp.gt.f32.partialorder %v635_v34, 0.0 }
 0x2ed   :  { %v1649_v38 = vsel %vm645_vm8, %v635_v34, %v649_v37  ;;  %v72_v34 = vld [vmem:[%s1824_s6 + $0x8] sm:$0xff]  ;;  %v74_v37 = vld [vmem:[%s1824_s6 + $0x18] sm:$0xff] }
 0x34a   :  { %v359_v20 = vpop.permute.xlu0 %358 }
 0x34b   :  { %v1639_v21 = vmul.f32 %v359_v20, %v1508_v41  ;;  %v1652_v41 = vsel %vm644_vm9, %v630_v35, %v648_v40  ;;  %v73_v35 = vld [vmem:[%s1824_s6 + $0x10] sm:$0xff] }
 0x34c   :  { %v374_v22 = vpop.permute.xlu1 %373 }
 0x34d   :  { %392 = vrot.lane.b32.xlu0 %v1639_v21, %s1314_s16  ;;  %v379_v30 = vmul.f32 %v374_v22, %v1502_v36  ;;  %v640_v36 = vadd.f32 %v1189_v32, %v1490_v23  ;;  %v625_v23 = vadd.f32 %v624_v31, %v1494_v26 }
 0x34e   :  { %v369_v24 = vpop.permute.xlu0 %368 }
 0x34f   :  { %vm646_vm10 = vcmp.gt.f32.partialorder %v640_v36, 0.0  ;;  %v378_v28 = vmul.f32 %v369_v24, %v1505_v39  ;;  %v647_v49 = vmul.f32 0.01, %v625_v23  ;;  %vm643_vm11 = vcmp.gt.f32.partialorder %v625_v23, 0.0 }
 0x350   :  { %v364_v25 = vpop.permute.xlu1 %363 }
 0x351   :  { %v377_v27 = vmul.f32 %v364_v25, %v1511_v42  ;;  %v650_v42 = vmul.f32 0.01, %v640_v36  ;;  %v1666_v50 = vsel %vm643_vm11, %v625_v23, %v647_v49 }
 0x353   :  { %394 = vrot.lane.b32.xlu1 %v377_v27, %s1314_s16  ;;  %v1656_v48 = vsel %vm646_vm10, %v640_v36, %v650_v42 }
 0x357   :  { %398 = vrot.lane.b32.xlu1 %v379_v30, %s1314_s16 }
 0x36c   :  { %659 = vadd.xlane.f32.xlu0 %v1649_v38 }
 0x370   :  { %657 = vadd.xlane.f32.xlu0 %v1652_v41 }
 0x37b   :  { %661 = vadd.xlane.f32.xlu1 %v1656_v48 }
 0x386   :  { %396 = vrot.lane.b32.xlu0 %v378_v28, %s1314_s16 }
 0x38c   :  { %386 = vrot.lane.b32.xlu1 %v379_v30, %s1315_s20 }
 0x390   :  { %382 = vrot.lane.b32.xlu1 %v377_v27, %s1315_s20 }
 0x394   :  { %380 = vrot.lane.b32.xlu1 %v1639_v21, %s1315_s20 }
 0x3a5   :  { %655 = vadd.xlane.f32.xlu0 %v1666_v50 }
 0x3bb   :  { %384 = vrot.lane.b32.xlu0 %v378_v28, %s1315_s20 }
 0x3bf   :  { %v393_v26 = vpop.permute.xlu0 %392 }
 0x3c5   :  { %v395_v39 = vpop.permute.xlu1 %394 }
 0x3c9   :  { %v399_v52 = vpop.permute.xlu1 %398 }
 0x3ca   :  { %1130 = vmatprep.subr.msk.mxu1 %vm1004_vm1, %v399_v52 }
 0x3cb   :  { %1131 = vmatpush3.msk.msra.mxu1 %vm1004_vm1, %v399_v52 }
 0x3f5   :  { %v660_v53 = vpop.xlane.xlu0 %659 }
 0x3f6   :  { %v665_v9 = vmul.f32 0.0078125, %v660_v53 }
 0x3f9   :  { %v658_v54 = vpop.xlane.xlu0 %657 }
 0x3fa   :  { %v664_v13 = vmul.f32 0.0078125, %v658_v54 }
 0x3fd   :  { %v397_v55 = vpop.permute.xlu0 %396 }
 0x3fe   :  { %1132 = vmatprep.subr.msk.mxu1 %vm1004_vm1, %v397_v55 }
 0x3ff   :  { %1133 = vmatpush3.msk.msra.mxu1 %vm1004_vm1, %v397_v55 }
 0x400   :  { %1134 = vmatprep.subr.msk.mxu1 %vm1004_vm1, %v395_v39 }
 0x401   :  { %1135 = vmatpush3.msk.msra.mxu1 %vm1004_vm1, %v395_v39 }
 0x402   :  { %1136 = vmatprep.subr.msk.mxu1 %vm1004_vm1, %v393_v26 }
 0x403   :  { %1137 = vmatpush3.msk.msra.mxu1 %vm1004_vm1, %v393_v26 }
 0x404   :  { %1138 = vmatprep.subr.mxu1 %v379_v30  ;;  %v662_v56 = vpop.xlane.xlu1 %661 }
 0x405   :  { %1139 = vmatpush3.msra.mxu1 %v379_v30  ;;  %v666_v6 = vmul.f32 0.0078125, %v662_v56 }
 0x406   :  { %1140 = vmatprep.subr.mxu1 %v378_v28 }
 0x407   :  { %1141 = vmatpush3.msra.mxu1 %v378_v28 }
 0x408   :  { %1142 = vmatprep.subr.mxu1 %v377_v27  ;;  %v387_v57 = vpop.permute.xlu1 %386 }
 0x409   :  { %1143 = vmatpush3.msra.mxu1 %v377_v27 }
 0x40a   :  { %1144 = vmatprep.subr.mxu1 %v1639_v21 }
 0x40b   :  { %1145 = vmatpush3.msra.mxu1 %v1639_v21 }
 0x40c   :  { %1146 = vmatprep.subr.msk.mxu1 %vm1005_vm2, %v387_v57  ;;  %v383_v62 = vpop.permute.xlu1 %382 }
 0x40d   :  { %1147 = vmatpush3.msk.msra.mxu1 %vm1005_vm2, %v387_v57 }
 0x410   :  { %v381_v4 = vpop.permute.xlu1 %380 }
 0x42e   :  { %v656_v60 = vpop.xlane.xlu0 %655 }
 0x42f   :  { %v663_v15 = vmul.f32 0.0078125, %v656_v60 }
 0x432   :  { %v385_v63 = vpop.permute.xlu0 %384 }
 0x433   :  { %1148 = vmatprep.subr.msk.mxu1 %vm1005_vm2, %v385_v63 }
 0x434   :  { %1149 = vmatpush3.msk.msra.mxu1 %vm1005_vm2, %v385_v63 }
 0x435   :  { %1150 = vmatprep.subr.msk.mxu1 %vm1005_vm2, %v383_v62 }
 0x436   :  { %1151 = vmatpush3.msk.msra.mxu1 %vm1005_vm2, %v383_v62 }
 0x437   :  { %1152 = vmatprep.subr.msk.mxu1 %vm1005_vm2, %v381_v4 }
 0x438   :  { %1153 = vmatpush3.msk.msra.mxu1 %vm1005_vm2, %v381_v4 }
 0x439   :  { %1155 = vmatmul.mubr.msk.f32.vlgmr.msra.gmra.mxu1 %vm135_vm0, %v1701_v5  ;;  %1190 = vmatprep.subr.mxu1 %v666_v6 }
 0x43a   :  { %1191 = vmatpush3.msra.mxu1 %v666_v6  ;;  %1157 = vmatprep.mubr.msk.f32.mxu1 %vm135_vm0, %v1705_v7 }
 0x43b   :  { %1192 = vmatprep.subr.mxu1 %v665_v9 }
 0x43c   :  { %1193 = vmatpush3.msra.mxu1 %v665_v9 }
 0x43d   :  { %1158 = vmatmul.mubr.msk.f32.gmra.mxu1 %vm135_vm0, %v1713_v12  ;;  %1194 = vmatprep.subr.mxu1 %v664_v13 }
 0x43e   :  { %1195 = vmatpush3.msra.mxu1 %v664_v13  ;;  %1198 = vmatprep.mubr.msk.f32.mxu1 %vm258_vm7, %v1519_v44 }
 0x43f   :  { %1196 = vmatprep.subr.mxu1 %v663_v15 }
 0x440   :  { %1197 = vmatpush3.msra.mxu1 %v663_v15 }
 0x441   :  { %1199 = vmatmul.mubr.msk.f32.vlgmr.msra.gmra.mxu1 %vm258_vm7, %v1554_v58 }
 0x442   :  { %1201 = vmatprep.mubr.msk.f32.mxu1 %vm258_vm7, %v1556_v59 }
 0x445   :  { %1202 = vmatmul.mubr.msk.f32.gmra.mxu1 %vm258_vm7, %v1566_v61 }
 0x446   :  { %1228 = vmatprep.mubr.msk.f32.mxu1 %vm135_vm0, %v59_v51 }
 0x4f9   :  { %v1726_v17 = vpop.f32.mrf.mxu1 }
 0x4fb   :  { %v1728_v18 = vpop.f32.mrf.mxu1 }
 0x4fd   :  { %v1730_v19 = vpop.f32.mrf.mxu1 }
 0x4ff   :  { %v1732_v44 = vpop.f32.mrf.mxu1 }
 0x501   :  { %v1200_v20 = vpop.f32.mrf.mxu1 }
 0x502   :  { %v739_v61 = vadd.f32 %v1200_v20, %v1634_v16 }
 0x503   :  { %v733_v21 = vpop.f32.mrf.mxu1 }
 0x504   :  { %v734_v27 = vadd.f32 %v733_v21, %v1617_v8  ;;  %v71_v8 = vld [vmem:[%s1824_s6] sm:$0xff]  ;;  %s1317_s6 = smov [#allocation7]  }
 0x505   :  { %v1203_v22 = vpop.f32.mrf.mxu1 }
 0x506   :  { %v749_v58 = vadd.f32 %v1203_v22, %v1622_v10 }
 0x507   :  { %v743_v25 = vpop.f32.mrf.mxu1 }
 0x508   :  { %v744_v59 = vadd.f32 %v743_v25, %v1628_v14  ;;  %769 = vperm.xlu1 %1243, %v749_v58  }
 0x50a   :  { %764 = vperm.xlu0 %1242, %v744_v59  }
 0x50c   :  { %759 = vperm.xlu1 %1243, %v739_v61  }
 0x50e   :  { %754 = vperm.xlu0 %1242, %v734_v27  }
 0x583   :  { %v770_v29 = vpop.permute.xlu1 %769 }
 0x584   :  { %v775_v30 = vmul.f32 %v770_v29, %v1656_v48 }
 0x585   :  { %v765_v31 = vpop.permute.xlu0 %764 }
 0x586   :  { %v774_v32 = vmul.f32 %v765_v31, %v1649_v38  ;;  %794 = vrot.lane.b32.xlu1 %v775_v30, %s1314_s16 }
 0x587   :  { %v760_v10 = vpop.permute.xlu1 %759 }
 0x588   :  { %v773_v33 = vmul.f32 %v760_v10, %v1652_v41  ;;  %792 = vrot.lane.b32.xlu0 %v774_v32, %s1314_s16 }
 0x589   :  { %v755_v14 = vpop.permute.xlu0 %754 }
 0x58a   :  { %v772_v16 = vmul.f32 %v755_v14, %v1666_v50  ;;  %790 = vrot.lane.b32.xlu1 %v773_v33, %s1314_s16 }
 0x58c   :  { %788 = vrot.lane.b32.xlu0 %v772_v16, %s1314_s16 }
 0x58e   :  { %782 = vrot.lane.b32.xlu1 %v775_v30, %s1315_s20 }
 0x590   :  { %780 = vrot.lane.b32.xlu0 %v774_v32, %s1315_s20 }
 0x592   :  { %778 = vrot.lane.b32.xlu1 %v773_v33, %s1315_s20 }
 0x594   :  { %776 = vrot.lane.b32.xlu0 %v772_v16, %s1315_s20  ;;  %s899_s20 = sshll.u32 %s1317_s6, 4  ;;  %s900_s20 = int_to_ptr.vmem [resolvable:$true] %s899_s20 }
 0x595   :  { %s1284_s3 = scalar_lea.vmem %s900_s20, 1024  ;;  %p1289_p11 = scmp.lt.s32.totalorder %s900_s20, %s900_s20 }
 0x596   :  { %406 = vperm.xlu1 %1243, %v71_v8   ;;  %p1285_p10 = scmp.ne.s32.totalorder %s900_s20, %s1284_s3  ;;  %p1290_p12 = scmp.lt.s32.totalorder %s1284_s3, %s1284_s3 }
 0x598   :  { %411 = vperm.xlu0 %1242, %v72_v34   ;;  %p1291_p13 = por %p1290_p12, %p1289_p11 }
 0x59a   :  { %416 = vperm.xlu1 %1243, %v73_v35   ;;  %p1292_p0 = pnand %p1291_p13, %p1285_p10 }
 0x59c   :  { %421 = vperm.xlu0 %1242, %v74_v37  }
 0x5f8   :  { %v795_v38 = vpop.permute.xlu1 %794 }
 0x5f9   :  { %1204 = vmatprep.subr.msk.mxu1 %vm1004_vm1, %v795_v38 }
 0x5fa   :  { %1205 = vmatpush3.msk.msra.mxu1 %vm1004_vm1, %v795_v38  ;;  %v793_v40 = vpop.permute.xlu0 %792 }
 0x5fb   :  { %1206 = vmatprep.subr.msk.mxu1 %vm1004_vm1, %v793_v40 }
 0x5fc   :  { %v791_v41 = vpop.permute.xlu1 %790  ;;  %1207 = vmatpush3.msk.msra.mxu1 %vm1004_vm1, %v793_v40 }
 0x5fd   :  { %1208 = vmatprep.subr.msk.mxu1 %vm1004_vm1, %v791_v41 }
 0x5fe   :  { %1209 = vmatpush3.msk.msra.mxu1 %vm1004_vm1, %v791_v41  ;;  %v789_v36 = vpop.permute.xlu0 %788 }
 0x5ff   :  { %1210 = vmatprep.subr.msk.mxu1 %vm1004_vm1, %v789_v36 }
 0x600   :  { %1211 = vmatpush3.msk.msra.mxu1 %vm1004_vm1, %v789_v36  ;;  %v783_v42 = vpop.permute.xlu1 %782 }
 0x601   :  { %1212 = vmatprep.subr.mxu1 %v775_v30 }
 0x602   :  { %1213 = vmatpush3.msra.mxu1 %v775_v30  ;;  %v781_v48 = vpop.permute.xlu0 %780 }
 0x603   :  { %1214 = vmatprep.subr.mxu1 %v774_v32 }
 0x604   :  { %1215 = vmatpush3.msra.mxu1 %v774_v32  ;;  %v779_v24 = vpop.permute.xlu1 %778 }
 0x605   :  { %1216 = vmatprep.subr.mxu1 %v773_v33 }
 0x606   :  { %1217 = vmatpush3.msra.mxu1 %v773_v33  ;;  %v777_v28 = vpop.permute.xlu0 %776 }
 0x607   :  { %1218 = vmatprep.subr.mxu1 %v772_v16 }
 0x608   :  { %1219 = vmatpush3.msra.mxu1 %v772_v16 }
 0x609   :  { %1220 = vmatprep.subr.msk.mxu1 %vm1005_vm2, %v783_v42 }
 0x60a   :  { %1221 = vmatpush3.msk.msra.mxu1 %vm1005_vm2, %v783_v42 }
 0x60b   :  { %1222 = vmatprep.subr.msk.mxu1 %vm1005_vm2, %v781_v48 }
 0x60c   :  { %1223 = vmatpush3.msk.msra.mxu1 %vm1005_vm2, %v781_v48 }
 0x60d   :  { %1224 = vmatprep.subr.msk.mxu1 %vm1005_vm2, %v779_v24 }
 0x60e   :  { %1225 = vmatpush3.msk.msra.mxu1 %vm1005_vm2, %v779_v24 }
 0x60f   :  { %1226 = vmatprep.subr.msk.mxu1 %vm1005_vm2, %v777_v28 }
 0x610   :  { %1227 = vmatpush3.msk.msra.mxu1 %vm1005_vm2, %v777_v28 }
 0x611   :  { %v407_v23 = vpop.permute.xlu1 %406  ;;  %1229 = vmatmul.mubr.msk.f32.vlgmr.msra.gmra.mxu1 %vm135_vm0, %v1701_v5 }
 0x612   :  { %v503_v49 = vadd.f32 %v1728_v18, %v407_v23  ;;  %1231 = vmatprep.mubr.msk.f32.mxu1 %vm135_vm0, %v1705_v7 }
 0x613   :  { %v412_v50 = vpop.permute.xlu0 %411 }
 0x614   :  { %v521_v51 = vadd.f32 %v503_v49, %v1392_v3  ;;  %v508_v39 = vadd.f32 %v1726_v17, %v412_v50 }
 0x615   :  { %v417_v52 = vpop.permute.xlu1 %416  ;;  %1232 = vmatmul.mubr.msk.f32.gmra.mxu1 %vm135_vm0, %v1713_v12 }
 0x616   :  { %525 = vst [vmem:[#allocation7] sm:$0xff] %v521_v51  ;;  %v522_v11 = vadd.f32 %v508_v39, %v1378_v1  ;;  %v513_v26 = vadd.f32 %v1732_v44, %v417_v52 }
 0x617   :  { %v422_v53 = vpop.permute.xlu0 %421 }
 0x618   :  { %526 = vst [vmem:[#allocation7 + $0x8] sm:$0xff] %v522_v11  ;;  %v523_v54 = vadd.f32 %v513_v26, %v1387_v2  ;;  %v518_v55 = vadd.f32 %v1730_v19, %v422_v53 }
 0x61a   :  { %527 = vst [vmem:[#allocation7 + $0x10] sm:$0xff] %v523_v54  ;;  %v524_v3 = vadd.f32 %v518_v55, %v1373_v0 }
 0x61c   :  { %528 = vst [vmem:[#allocation7 + $0x18] sm:$0xff] %v524_v3 }
 0x6d1   :  { %v1230_v56 = vpop.f32.mrf.mxu1 }
 0x6d2   :  { %v872_v57 = vadd.f32 %v1230_v56, %v412_v50 }
 0x6d3   :  { %v866_v60 = vpop.f32.mrf.mxu1 }
 0x6d4   :  { %v886_v62 = vadd.f32 %v1528_v45, %v872_v57  ;;  %v867_v63 = vadd.f32 %v866_v60, %v407_v23 }
 0x6d5   :  { %v1233_v4 = vpop.f32.mrf.mxu1 }
 0x6d6   :  { %891 = vst [vmem:[#allocation7 + $0x28] sm:$0xff] %v886_v62  ;;  %v885_v1 = vadd.f32 %v1542_v47, %v867_v63  ;;  %v882_v5 = vadd.f32 %v1233_v4, %v422_v53 }
 0x6d7   :  { %v876_v6 = vpop.f32.mrf.mxu1 }
 0x6d8   :  { %890 = vst [vmem:[#allocation7 + $0x20] sm:$0xff] %v885_v1  ;;  %v888_v2 = vadd.f32 %v1533_v46, %v882_v5  ;;  %v877_v7 = vadd.f32 %v876_v6, %v417_v52 }
 0x6da   :  { %893 = vst [vmem:[#allocation7 + $0x38] sm:$0xff] %v888_v2  ;;  %v887_v0 = vadd.f32 %v1517_v43, %v877_v7 }
 0x6dc   :  { %892 = vst [vmem:[#allocation7 + $0x30] sm:$0xff] %v887_v0 }
 0x6dd   :  { %1295 = shalt.err (!%p1292_p0)
}
 0x6de   :  { %905 = dma.vmem_to_hbm [thread:$0]  %s900_s20, 1024, %s1825_s7, [#allocation4], %s1311_s27, %s1311_s27, %s1312_s28  }
 0x6df   :  { %1308 = dma.done.wait [#allocation4], 1024  }
 0x6e0   :  { %1309 = vsyncadd [#allocation4], 4294966272 }
 0x6e1   :  { %909 = vsyncpa [#allocation3], 1 }
 0x6e2   :  { %910 = vsyncpa [#allocation6], 1 }
 0x6e3   :  { %911 = vsyncpa [#allocation4], 1 }

</bundles_post_ra>
